<compile_context>
chip_gen: v7x
topology: tpu7x:2x2x1
jax: 0.10.0
libtpu: 0.0.40
codegen_flags: <defaults>
</compile_context>

<pallas_src>
import functools

import jax
import jax.numpy as jnp
from jax.experimental import pallas as pl
from jax.experimental.pallas import tpu as pltpu

_LANE = 128
_MAX_TILE_ROWS = 2048   # rows per tile cap (~1 MiB f32); keep multiple of 32 for int8
_SPLIT_MIN_ROWS = 512   # below this, the 2-core split overhead exceeds the benefit


def _round_up(n, m):
    return ((n + m - 1) // m) * m


def _cdiv(a, b):
    return -(-a // b)


def _owse_kernel(x_ref, t_ref, pcnl_ref, delta_ref, w_ref, o_ref,
                 num_acc, den_acc, *, n_classes, steps, total_tiles,
                 tile_rows, rows_valid, ncore):
    """Per-tile PCNL interpolation + weighted squared-error accumulation."""
    c = pl.program_id(0)          # core-split axis ("parallel")
    s = pl.program_id(1)          # per-core row-tile step ("arbitrary")
    tile = c * steps + s          # global row-tile index (may exceed total_tiles-1)

    @pl.when(s == 0)
    def _init():
        num_acc[...] = jnp.zeros_like(num_acc)
        den_acc[...] = jnp.zeros_like(den_acc)

    inv_cm1 = jnp.float32(1.0 / (n_classes - 1))

    def accumulate(masked):
        x = x_ref[...]                           # (TR, 128) f32 regression preds
        tf = t_ref[...].astype(jnp.float32)      # int8 ids -> f32 (compares stay f32)

        if masked:
            # Rows past the true data (ragged last tile) hold stale VMEM; mask them.
            row = tile * tile_rows + jax.lax.broadcasted_iota(jnp.int32, x.shape, 0)
            valid = row < rows_valid
            x = jnp.where(valid, x, 0.0)         # keep downstream math finite

        # Exact float equality on floor(x) is fine for ordinal outputs (|x| << 2^23).
        fl = jnp.floor(x)
        frac = x - fl

        pcnl_floor = fl * inv_cm1                # fallback: key not in PCNL map
        delta = jnp.full_like(x, inv_cm1)        # fallback slope 1/(C-1)
        target_pcnl = jnp.zeros_like(x)
        target_w = jnp.zeros_like(x)

        # n_classes is a small trace-time constant: unrolled VPU table lookup,
        # 2 compares + 4 selects per class (dedup'd masks), scalars from SMEM.
        for k in range(n_classes):
            ck = jnp.float32(k)
            mf = fl == ck                        # serves pcnl_floor AND delta
            mt = tf == ck                        # serves target_pcnl AND target_weight
            pcnl_floor = jnp.where(mf, pcnl_ref[k], pcnl_floor)
            delta = jnp.where(mf, delta_ref[k], delta)
            target_pcnl = jnp.where(mt, pcnl_ref[k], target_pcnl)
            target_w = jnp.where(mt, w_ref[k], target_w)

        if masked:
            target_w = jnp.where(valid, target_w, 0.0)   # masked rows contribute 0

        diff = pcnl_floor + delta * frac - target_pcnl

        # Per-lane running sums (pure VPU work).
        num_acc[...] += diff * diff * target_w
        den_acc[...] += target_w

    regular = (rows_valid == total_tiles * tile_rows) and (total_tiles == ncore * steps)
    if regular:
        # Every grid step maps to a fully valid tile: no masking, no guards.
        accumulate(masked=False)
    else:
        last = total_tiles - 1

        @pl.when(tile < last)
        def _interior():
            accumulate(masked=False)

        @pl.when(tile == last)
        def _ragged():
            accumulate(masked=True)
        # tile > last: phantom step (index_map clamps its DMA in-bounds); skipped.

    @pl.when(s == steps - 1)
    def _finalize():
        # Lane-dense per-core partials: row 0 = num, row 1 = den (full 128 lanes).
        o_ref[0, 0:1, :] = jnp.sum(num_acc[...], axis=0, keepdims=True)
        o_ref[0, 1:2, :] = jnp.sum(den_acc[...], axis=0, keepdims=True)


def make_pcnl_table(distribution):
    """PCNL_map[i] = (sum(d[0:i]) + sum(d[1:i+1])) / (2*sum(d) - d[0] - d[-1])."""
    d = jnp.asarray(distribution, jnp.float32)
    n = d.shape[0]
    denom = 2.0 * jnp.sum(d) - d[0] - d[n - 1]
    vals = [(jnp.sum(d[0:i]) + jnp.sum(d[1:i + 1])) / denom for i in range(n)]
    return jnp.stack(vals).astype(jnp.float32)


def ordinal_weighted_error(inputs, targets, weight, distribution):
    """Pallas-backed forward of OrdinalWeightedError. Returns a scalar."""
    n_classes = int(distribution.shape[0])
    assert 2 <= n_classes < 128, "class ids are streamed as int8: need 2 <= C < 128"

    inv_cm1 = 1.0 / (n_classes - 1)
    pcnl = make_pcnl_table(distribution)                       # (C,) f32 SMEM table
    w = jnp.asarray(weight, jnp.float32).reshape(-1)           # (C,) f32 SMEM table
    # delta[c] = PCNL[c+1] - PCNL[c]; at c == C-1 the ceil key C uses the
    # out-of-map fallback C/(C-1).  (PCNL[0] == 0 covers the floor == -1 case.)
    pcnl_next = jnp.concatenate(
        [pcnl[1:], jnp.full((1,), n_classes * inv_cm1, jnp.float32)])
    delta = pcnl_next - pcnl                                   # (C,) f32 SMEM table

    x = jnp.asarray(inputs, jnp.float32).reshape(-1)
    t = jnp.asarray(targets, jnp.int8).reshape(-1)             # class ids fit int8
    n = x.shape[0]

    rows = _cdiv(n, _LANE)
    n_pad = rows * _LANE
    if n_pad != n:
        # Lane-boundary pad only (< 128 elems); padded targets = -1 -> weight 0.
        x = jnp.pad(x, (0, n_pad - n))
        t = jnp.pad(t, (0, n_pad - n), constant_values=jnp.int8(-1))
    x2d = x.reshape(rows, _LANE)
    t2d = t.reshape(rows, _LANE)

    if rows >= _SPLIT_MIN_ROWS:
        ncore = 2   # leading "parallel" axis -> both TensorCores on v7x megacore
        tr = min(_MAX_TILE_ROWS,
                 _round_up(_cdiv(rows, ncore), 32),   # ~half the rows per tile
                 (rows // 32) * 32)                   # never larger than the array
    else:
        ncore = 1
        tr = rows                                     # one full-array tile (legal dims)
    total_tiles = _cdiv(rows, tr)
    steps = _cdiv(total_tiles, ncore)                 # row-tiles per core

    def in_index(c, s):
        # Clamp phantom steps (total_tiles % ncore != 0) onto the last real tile
        # so their DMA stays in bounds; the kernel skips / masks them.
        return (jnp.minimum(c * steps + s, total_tiles - 1), 0)

    out = pl.pallas_call(
        functools.partial(_owse_kernel, n_classes=n_classes, steps=steps,
                          total_tiles=total_tiles, tile_rows=tr,
                          rows_valid=rows, ncore=ncore),
        out_shape=jax.ShapeDtypeStruct((ncore, 2, _LANE), jnp.float32),
        grid_spec=pltpu.PrefetchScalarGridSpec(
            num_scalar_prefetch=0,
            grid=(ncore, steps),
            in_specs=[
                pl.BlockSpec((tr, _LANE), in_index),                  # input  f32
                pl.BlockSpec((tr, _LANE), in_index),                  # target int8
                pl.BlockSpec(memory_space=pltpu.MemorySpace.SMEM),    # pcnl  (C,)
                pl.BlockSpec(memory_space=pltpu.MemorySpace.SMEM),    # delta (C,)
                pl.BlockSpec(memory_space=pltpu.MemorySpace.SMEM),    # weight (C,)
            ],
            out_specs=pl.BlockSpec((1, 2, _LANE), lambda c, s: (c, 0, 0)),
            scratch_shapes=[
                pltpu.VMEM((tr, _LANE), jnp.float32),   # num accumulator
                pltpu.VMEM((tr, _LANE), jnp.float32),   # den accumulator
            ],
        ),
        compiler_params=pltpu.CompilerParams(
            dimension_semantics=("parallel", "arbitrary")),
    )(x2d, t2d, pcnl, delta, w)

    num = jnp.sum(out[:, 0, :])
    den = jnp.sum(out[:, 1, :])
    # den == 0 (no valid targets) yields NaN, matching the PyTorch module's 0/0.
    return num / den


def ordinal_weighted_error_ref(inputs, targets, weight, distribution):
    """Pure-JAX reference mirroring the PyTorch forward."""
    n_classes = int(distribution.shape[0])
    pcnl = make_pcnl_table(distribution)
    w = jnp.asarray(weight, jnp.float32)
    x = jnp.asarray(inputs, jnp.float32)
    t = jnp.asarray(targets, jnp.int32)

    fl = jnp.floor(x)
    ce = fl + 1.0

    def lookup(v):
        out = v / (n_classes - 1)
        for c in range(n_classes):
            out = jnp.where(v == float(c), pcnl[c], out)
        return out

    pf = lookup(fl)
    pc = lookup(ce)
    input_pcnl = pf + (pc - pf) * (x - fl)
    target_pcnl = pcnl[t]
    target_w = w[t]
    return jnp.sum((input_pcnl - target_pcnl) ** 2 * target_w) / jnp.sum(target_w)


if __name__ == "__main__":
    key = jax.random.PRNGKey(0)
    k1, k2, k3, k4, k5, k6 = jax.random.split(key, 6)

    n_classes = 5
    # Deterministic "parameters" from the module's __init__:
    #   weight: per-class weights, distribution: per-class counts.
    weight = jnp.arange(1, n_classes + 1, dtype=jnp.float32)                # (5,)
    distribution = jnp.array([10.0, 20.0, 30.0, 25.0, 15.0], jnp.float32)   # (5,)

    def check(kin, ktgt, batch, atol, rtol):
        inputs = jax.random.uniform(
            kin, (batch,), jnp.float32, minval=-0.5, maxval=n_classes - 0.5)
        targets = jax.random.randint(ktgt, (batch,), 0, n_classes, jnp.int32)
        loss = jax.block_until_ready(
            ordinal_weighted_error(inputs, targets, weight, distribution))
        loss_ref = ordinal_weighted_error_ref(inputs, targets, weight, distribution)
        assert jnp.allclose(loss, loss_ref, atol=atol, rtol=rtol), (batch, loss, loss_ref)

    # Tiny: 1 row, single full-array tile, grid (1, 1).
    check(k1, k2, 8, 1e-6, 1e-4)
    # Mid: 313 rows -> single-core, single-tile path with lane-boundary pad.
    check(k3, k4, 40000, 1e-6, 1e-4)
    # Large: 4688 rows -> 2-way core split, 2048-row tiles, ragged last tile
    # and one phantom grid step (accumulation-order drift -> slightly looser rtol).
    check(k5, k6, 600000, 1e-6, 2e-4)

    print("KERNEL_OK")
</pallas_src>

<mosaic_0001>
module attributes {stable_mosaic.version = 11 : i64} {
  func.func @_owse_kernel(%arg0: i32, %arg1: i32, %arg2: memref<1x128xf32, #tpu.memory_space<vmem>>, %arg3: memref<1x128xi8, #tpu.memory_space<vmem>>, %arg4: memref<5xf32, #tpu.memory_space<smem>>, %arg5: memref<5xf32, #tpu.memory_space<smem>>, %arg6: memref<5xf32, #tpu.memory_space<smem>>, %arg7: memref<1x2x128xf32, #tpu.memory_space<vmem>>, %arg8: memref<1x128xf32, #tpu.memory_space<vmem>>, %arg9: memref<1x128xf32, #tpu.memory_space<vmem>>) attributes {dimension_semantics = [#tpu.dimension_semantics<parallel>, #tpu.dimension_semantics<arbitrary>], iteration_bounds = array<i64: 1, 1>, scalar_prefetch = 0 : i64, scratch_operands = 2 : i64, tpu.core_type = #tpu.core_type<tc>, window_params = [{transform_indices = @transform_0, window_bounds = array<i64: 1, 128>}, {transform_indices = @transform_1, window_bounds = array<i64: 1, 128>}, {transform_indices = @transform_2, window_bounds = array<i64: 5>}, {transform_indices = @transform_3, window_bounds = array<i64: 5>}, {transform_indices = @transform_4, window_bounds = array<i64: 5>}, {transform_indices = @transform_5, window_bounds = array<i64: 1, 2, 128>}]} {
    %c0_i32 = arith.constant 0 : i32
    %0 = arith.cmpi eq, %arg1, %c0_i32 : i32
    %1 = arith.extui %0 : i1 to i32
    %c0_i32_0 = arith.constant 0 : i32
    %2 = arith.cmpi ne, %1, %c0_i32_0 : i32
    scf.if %2 {
      %cst_43 = arith.constant 0.000000e+00 : f32
      %107 = vector.broadcast %cst_43 : f32 to vector<1x128xf32>
      %c0_44 = arith.constant 0 : index
      %c0_45 = arith.constant 0 : index
      %108 = vector.load %arg8[%c0_44, %c0_45] : memref<1x128xf32, #tpu.memory_space<vmem>>, vector<1x128xf32>
      tpu.vector_store %arg8[%c0_44, %c0_45], %107 {strides = array<i32>} : memref<1x128xf32, #tpu.memory_space<vmem>>, vector<1x128xf32>,
      %cst_46 = arith.constant 0.000000e+00 : f32
      %109 = vector.broadcast %cst_46 : f32 to vector<1x128xf32>
      %c0_47 = arith.constant 0 : index
      %c0_48 = arith.constant 0 : index
      %110 = vector.load %arg9[%c0_47, %c0_48] : memref<1x128xf32, #tpu.memory_space<vmem>>, vector<1x128xf32>
      tpu.vector_store %arg9[%c0_47, %c0_48], %109 {strides = array<i32>} : memref<1x128xf32, #tpu.memory_space<vmem>>, vector<1x128xf32>,
    } else {
    }
    %c0 = arith.constant 0 : index
    %c0_1 = arith.constant 0 : index
    %3 = vector.load %arg2[%c0, %c0_1] : memref<1x128xf32, #tpu.memory_space<vmem>>, vector<1x128xf32>
    %c0_2 = arith.constant 0 : index
    %c0_3 = arith.constant 0 : index
    %4 = vector.load %arg3[%c0_2, %c0_3] : memref<1x128xi8, #tpu.memory_space<vmem>>, vector<1x128xi8>
    %5 = arith.sitofp %4 : vector<1x128xi8> to vector<1x128xf32>
    %6 = math.floor %3 : vector<1x128xf32>
    %7 = arith.subf %3, %6 : vector<1x128xf32>
    %cst = arith.constant 2.500000e-01 : f32
    %8 = vector.broadcast %cst : f32 to vector<1x128xf32>
    %9 = arith.mulf %6, %8 : vector<1x128xf32>
    %cst_4 = arith.constant 2.500000e-01 : f32
    %10 = vector.broadcast %cst_4 : f32 to vector<1x128xf32>
    %cst_5 = arith.constant 0.000000e+00 : f32
    %11 = vector.broadcast %cst_5 : f32 to vector<1x128xf32>
    %cst_6 = arith.constant 0.000000e+00 : f32
    %12 = vector.broadcast %cst_6 : f32 to vector<1x128xf32>
    %cst_7 = arith.constant 0.000000e+00 : f32
    %13 = vector.broadcast %cst_7 : f32 to vector<1x128xf32>
    %14 = arith.cmpf oeq, %6, %13 : vector<1x128xf32>
    %cst_8 = arith.constant 0.000000e+00 : f32
    %15 = vector.broadcast %cst_8 : f32 to vector<1x128xf32>
    %16 = arith.cmpf oeq, %5, %15 : vector<1x128xf32>
    %c0_9 = arith.constant 0 : index
    %17 = memref.load %arg4[%c0_9] : memref<5xf32, #tpu.memory_space<smem>>
    %18 = vector.broadcast %17 : f32 to vector<1x128xf32>
    %19 = arith.select %14, %18, %9 : vector<1x128xi1>, vector<1x128xf32>
    %c0_10 = arith.constant 0 : index
    %20 = memref.load %arg5[%c0_10] : memref<5xf32, #tpu.memory_space<smem>>
    %21 = vector.broadcast %20 : f32 to vector<1x128xf32>
    %22 = arith.select %14, %21, %10 : vector<1x128xi1>, vector<1x128xf32>
    %c0_11 = arith.constant 0 : index
    %23 = memref.load %arg4[%c0_11] : memref<5xf32, #tpu.memory_space<smem>>
    %24 = vector.broadcast %23 : f32 to vector<1x128xf32>
    %25 = arith.select %16, %24, %11 : vector<1x128xi1>, vector<1x128xf32>
    %c0_12 = arith.constant 0 : index
    %26 = memref.load %arg6[%c0_12] : memref<5xf32, #tpu.memory_space<smem>>
    %27 = vector.broadcast %26 : f32 to vector<1x128xf32>
    %28 = arith.select %16, %27, %12 : vector<1x128xi1>, vector<1x128xf32>
    %cst_13 = arith.constant 1.000000e+00 : f32
    %29 = vector.broadcast %cst_13 : f32 to vector<1x128xf32>
    %30 = arith.cmpf oeq, %6, %29 : vector<1x128xf32>
    %cst_14 = arith.constant 1.000000e+00 : f32
    %31 = vector.broadcast %cst_14 : f32 to vector<1x128xf32>
    %32 = arith.cmpf oeq, %5, %31 : vector<1x128xf32>
    %c1 = arith.constant 1 : index
    %33 = memref.load %arg4[%c1] : memref<5xf32, #tpu.memory_space<smem>>
    %34 = vector.broadcast %33 : f32 to vector<1x128xf32>
    %35 = arith.select %30, %34, %19 : vector<1x128xi1>, vector<1x128xf32>
    %c1_15 = arith.constant 1 : index
    %36 = memref.load %arg5[%c1_15] : memref<5xf32, #tpu.memory_space<smem>>
    %37 = vector.broadcast %36 : f32 to vector<1x128xf32>
    %38 = arith.select %30, %37, %22 : vector<1x128xi1>, vector<1x128xf32>
    %c1_16 = arith.constant 1 : index
    %39 = memref.load %arg4[%c1_16] : memref<5xf32, #tpu.memory_space<smem>>
    %40 = vector.broadcast %39 : f32 to vector<1x128xf32>
    %41 = arith.select %32, %40, %25 : vector<1x128xi1>, vector<1x128xf32>
    %c1_17 = arith.constant 1 : index
    %42 = memref.load %arg6[%c1_17] : memref<5xf32, #tpu.memory_space<smem>>
    %43 = vector.broadcast %42 : f32 to vector<1x128xf32>
    %44 = arith.select %32, %43, %28 : vector<1x128xi1>, vector<1x128xf32>
    %cst_18 = arith.constant 2.000000e+00 : f32
    %45 = vector.broadcast %cst_18 : f32 to vector<1x128xf32>
    %46 = arith.cmpf oeq, %6, %45 : vector<1x128xf32>
    %cst_19 = arith.constant 2.000000e+00 : f32
    %47 = vector.broadcast %cst_19 : f32 to vector<1x128xf32>
    %48 = arith.cmpf oeq, %5, %47 : vector<1x128xf32>
    %c2 = arith.constant 2 : index
    %49 = memref.load %arg4[%c2] : memref<5xf32, #tpu.memory_space<smem>>
    %50 = vector.broadcast %49 : f32 to vector<1x128xf32>
    %51 = arith.select %46, %50, %35 : vector<1x128xi1>, vector<1x128xf32>
    %c2_20 = arith.constant 2 : index
    %52 = memref.load %arg5[%c2_20] : memref<5xf32, #tpu.memory_space<smem>>
    %53 = vector.broadcast %52 : f32 to vector<1x128xf32>
    %54 = arith.select %46, %53, %38 : vector<1x128xi1>, vector<1x128xf32>
    %c2_21 = arith.constant 2 : index
    %55 = memref.load %arg4[%c2_21] : memref<5xf32, #tpu.memory_space<smem>>
    %56 = vector.broadcast %55 : f32 to vector<1x128xf32>
    %57 = arith.select %48, %56, %41 : vector<1x128xi1>, vector<1x128xf32>
    %c2_22 = arith.constant 2 : index
    %58 = memref.load %arg6[%c2_22] : memref<5xf32, #tpu.memory_space<smem>>
    %59 = vector.broadcast %58 : f32 to vector<1x128xf32>
    %60 = arith.select %48, %59, %44 : vector<1x128xi1>, vector<1x128xf32>
    %cst_23 = arith.constant 3.000000e+00 : f32
    %61 = vector.broadcast %cst_23 : f32 to vector<1x128xf32>
    %62 = arith.cmpf oeq, %6, %61 : vector<1x128xf32>
    %cst_24 = arith.constant 3.000000e+00 : f32
    %63 = vector.broadcast %cst_24 : f32 to vector<1x128xf32>
    %64 = arith.cmpf oeq, %5, %63 : vector<1x128xf32>
    %c3 = arith.constant 3 : index
    %65 = memref.load %arg4[%c3] : memref<5xf32, #tpu.memory_space<smem>>
    %66 = vector.broadcast %65 : f32 to vector<1x128xf32>
    %67 = arith.select %62, %66, %51 : vector<1x128xi1>, vector<1x128xf32>
    %c3_25 = arith.constant 3 : index
    %68 = memref.load %arg5[%c3_25] : memref<5xf32, #tpu.memory_space<smem>>
    %69 = vector.broadcast %68 : f32 to vector<1x128xf32>
    %70 = arith.select %62, %69, %54 : vector<1x128xi1>, vector<1x128xf32>
    %c3_26 = arith.constant 3 : index
    %71 = memref.load %arg4[%c3_26] : memref<5xf32, #tpu.memory_space<smem>>
    %72 = vector.broadcast %71 : f32 to vector<1x128xf32>
    %73 = arith.select %64, %72, %57 : vector<1x128xi1>, vector<1x128xf32>
    %c3_27 = arith.constant 3 : index
    %74 = memref.load %arg6[%c3_27] : memref<5xf32, #tpu.memory_space<smem>>
    %75 = vector.broadcast %74 : f32 to vector<1x128xf32>
    %76 = arith.select %64, %75, %60 : vector<1x128xi1>, vector<1x128xf32>
    %cst_28 = arith.constant 4.000000e+00 : f32
    %77 = vector.broadcast %cst_28 : f32 to vector<1x128xf32>
    %78 = arith.cmpf oeq, %6, %77 : vector<1x128xf32>
    %cst_29 = arith.constant 4.000000e+00 : f32
    %79 = vector.broadcast %cst_29 : f32 to vector<1x128xf32>
    %80 = arith.cmpf oeq, %5, %79 : vector<1x128xf32>
    %c4 = arith.constant 4 : index
    %81 = memref.load %arg4[%c4] : memref<5xf32, #tpu.memory_space<smem>>
    %82 = vector.broadcast %81 : f32 to vector<1x128xf32>
    %83 = arith.select %78, %82, %67 : vector<1x128xi1>, vector<1x128xf32>
    %c4_30 = arith.constant 4 : index
    %84 = memref.load %arg5[%c4_30] : memref<5xf32, #tpu.memory_space<smem>>
    %85 = vector.broadcast %84 : f32 to vector<1x128xf32>
    %86 = arith.select %78, %85, %70 : vector<1x128xi1>, vector<1x128xf32>
    %c4_31 = arith.constant 4 : index
    %87 = memref.load %arg4[%c4_31] : memref<5xf32, #tpu.memory_space<smem>>
    %88 = vector.broadcast %87 : f32 to vector<1x128xf32>
    %89 = arith.select %80, %88, %73 : vector<1x128xi1>, vector<1x128xf32>
    %c4_32 = arith.constant 4 : index
    %90 = memref.load %arg6[%c4_32] : memref<5xf32, #tpu.memory_space<smem>>
    %91 = vector.broadcast %90 : f32 to vector<1x128xf32>
    %92 = arith.select %80, %91, %76 : vector<1x128xi1>, vector<1x128xf32>
    %93 = arith.mulf %86, %7 : vector<1x128xf32>
    %94 = arith.addf %83, %93 : vector<1x128xf32>
    %95 = arith.subf %94, %89 : vector<1x128xf32>
    %c0_33 = arith.constant 0 : index
    %c0_34 = arith.constant 0 : index
    %96 = vector.load %arg8[%c0_33, %c0_34] : memref<1x128xf32, #tpu.memory_space<vmem>>, vector<1x128xf32>
    %97 = arith.mulf %95, %95 : vector<1x128xf32>
    %98 = arith.mulf %97, %92 : vector<1x128xf32>
    %99 = arith.addf %96, %98 : vector<1x128xf32>
    %c0_35 = arith.constant 0 : index
    %c0_36 = arith.constant 0 : index
    %100 = vector.load %arg8[%c0_35, %c0_36] : memref<1x128xf32, #tpu.memory_space<vmem>>, vector<1x128xf32>
    tpu.vector_store %arg8[%c0_35, %c0_36], %99 {strides = array<i32>} : memref<1x128xf32, #tpu.memory_space<vmem>>, vector<1x128xf32>,
    %c0_37 = arith.constant 0 : index
    %c0_38 = arith.constant 0 : index
    %101 = vector.load %arg9[%c0_37, %c0_38] : memref<1x128xf32, #tpu.memory_space<vmem>>, vector<1x128xf32>
    %102 = arith.addf %101, %92 : vector<1x128xf32>
    %c0_39 = arith.constant 0 : index
    %c0_40 = arith.constant 0 : index
    %103 = vector.load %arg9[%c0_39, %c0_40] : memref<1x128xf32, #tpu.memory_space<vmem>>, vector<1x128xf32>
    tpu.vector_store %arg9[%c0_39, %c0_40], %102 {strides = array<i32>} : memref<1x128xf32, #tpu.memory_space<vmem>>, vector<1x128xf32>,
    %c0_i32_41 = arith.constant 0 : i32
    %104 = arith.cmpi eq, %arg1, %c0_i32_41 : i32
    %105 = arith.extui %104 : i1 to i32
    %c0_i32_42 = arith.constant 0 : i32
    %106 = arith.cmpi ne, %105, %c0_i32_42 : i32
    scf.if %106 {
      %c0_43 = arith.constant 0 : index
      %c0_44 = arith.constant 0 : index
      %107 = vector.load %arg8[%c0_43, %c0_44] : memref<1x128xf32, #tpu.memory_space<vmem>>, vector<1x128xf32>
      %cst_45 = arith.constant dense<0.000000e+00> : vector<128xf32>
      %108 = vector.multi_reduction <add>, %107, %cst_45 [0] : vector<1x128xf32> to vector<128xf32>
      %109 = vector.shape_cast %108 : vector<128xf32> to vector<1x128xf32>
      %c0_46 = arith.constant 0 : index
      %c0_47 = arith.constant 0 : index
      %c0_48 = arith.constant 0 : index
      %110 = vector.load %arg7[%c0_46, %c0_47, %c0_48] : memref<1x2x128xf32, #tpu.memory_space<vmem>>, vector<1x1x128xf32>
      %111 = vector.shape_cast %110 : vector<1x1x128xf32> to vector<1x128xf32>
      %112 = vector.shape_cast %109 : vector<1x128xf32> to vector<1x1x128xf32>
      tpu.vector_store %arg7[%c0_46, %c0_47, %c0_48], %112 {strides = array<i32>} : memref<1x2x128xf32, #tpu.memory_space<vmem>>, vector<1x1x128xf32>,
      %c0_49 = arith.constant 0 : index
      %c0_50 = arith.constant 0 : index
      %113 = vector.load %arg9[%c0_49, %c0_50] : memref<1x128xf32, #tpu.memory_space<vmem>>, vector<1x128xf32>
      %cst_51 = arith.constant dense<0.000000e+00> : vector<128xf32>
      %114 = vector.multi_reduction <add>, %113, %cst_51 [0] : vector<1x128xf32> to vector<128xf32>
      %115 = vector.shape_cast %114 : vector<128xf32> to vector<1x128xf32>
      %c0_52 = arith.constant 0 : index
      %c1_53 = arith.constant 1 : index
      %c0_54 = arith.constant 0 : index
      %116 = vector.load %arg7[%c0_52, %c1_53, %c0_54] : memref<1x2x128xf32, #tpu.memory_space<vmem>>, vector<1x1x128xf32>
      %117 = vector.shape_cast %116 : vector<1x1x128xf32> to vector<1x128xf32>
      %118 = vector.shape_cast %115 : vector<1x128xf32> to vector<1x1x128xf32>
      tpu.vector_store %arg7[%c0_52, %c1_53, %c0_54], %118 {strides = array<i32>} : memref<1x2x128xf32, #tpu.memory_space<vmem>>, vector<1x1x128xf32>,
    } else {
    }
    return
  }
  func.func @transform_0(%arg0: i32, %arg1: i32) -> (i32, i32) {
    %c1_i32 = arith.constant 1 : i32
    %0 = arith.muli %arg0, %c1_i32 : i32
    %1 = arith.addi %0, %arg1 : i32
    %c0_i32 = arith.constant 0 : i32
    %2 = arith.minsi %1, %c0_i32 : i32
    %c0_i32_0 = arith.constant 0 : i32
    %c0_i32_1 = arith.constant 0 : i32
    return %2, %c0_i32_0 : i32, i32
  }
  func.func @transform_1(%arg0: i32, %arg1: i32) -> (i32, i32) {
    %c1_i32 = arith.constant 1 : i32
    %0 = arith.muli %arg0, %c1_i32 : i32
    %1 = arith.addi %0, %arg1 : i32
    %c0_i32 = arith.constant 0 : i32
    %2 = arith.minsi %1, %c0_i32 : i32
    %c0_i32_0 = arith.constant 0 : i32
    %c0_i32_1 = arith.constant 0 : i32
    return %2, %c0_i32_0 : i32, i32
  }
  func.func @transform_2(%arg0: i32, %arg1: i32) -> i32 {
    %c0_i32 = arith.constant 0 : i32
    %c0_i32_0 = arith.constant 0 : i32
    return %c0_i32 : i32
  }
  func.func @transform_3(%arg0: i32, %arg1: i32) -> i32 {
    %c0_i32 = arith.constant 0 : i32
    %c0_i32_0 = arith.constant 0 : i32
    return %c0_i32 : i32
  }
  func.func @transform_4(%arg0: i32, %arg1: i32) -> i32 {
    %c0_i32 = arith.constant 0 : i32
    %c0_i32_0 = arith.constant 0 : i32
    return %c0_i32 : i32
  }
  func.func @transform_5(%arg0: i32, %arg1: i32) -> (i32, i32, i32) {
    %c0_i32 = arith.constant 0 : i32
    %c0_i32_0 = arith.constant 0 : i32
    %c0_i32_1 = arith.constant 0 : i32
    return %arg0, %c0_i32, %c0_i32_0 : i32, i32, i32
  }
}

</mosaic_0001>

<bundles_post_ra>
// kernel: tpu_custom_call.1
= control target key start
LH: loop header
LB: loop body
LE: loop exit
PB: predicated region body
PF: predicated region fallthrough
CT: control target
= control target key end

     0   :  { %10 = vsyncpa [#allocation5], 0  ;;  %s483_s0 = inlined_call_operand.hbm [shape: f32[1,128], index: 0, kind: input, shape index: {}]   ;;  %s484_s1 = inlined_call_operand.vmem [shape: s8[1,128], index: 1, kind: input, shape index: {}]   ;;  %s485_s2 = inlined_call_operand.vmem [shape: f32[5], index: 2, kind: input, shape index: {}]   ;;  %s486_s3 = inlined_call_operand.vmem [shape: f32[5], index: 3, kind: input, shape index: {}]   ;;  %s487_s4 = inlined_call_operand.vmem [shape: f32[5], index: 4, kind: input, shape index: {}]   ;;  %s488_s5 = inlined_call_operand.hbm [shape: f32[1,2,128], index: 5, kind: output, shape index: {}]  }
   0x1   :  { %11 = vsyncpa [#allocation7], 0 }
   0x2   :  { %12 = vsyncpa [#allocation10], 0  ;;  %s56_s20 = sshll.u32 %s486_s3, 4  ;;  %s57_s20 = int_to_ptr.vmem [resolvable:$true] %s56_s20 }
   0x3   :  { %13 = vsyncpa [#allocation6], 0  ;;  %s234_s21 = scalar_lea.vmem %s57_s20, 16  ;;  %p239_p1 = scmp.lt.s32.totalorder %s57_s20, %s57_s20 }
   0x4   :  { %p235_p0 = scmp.ne.s32.totalorder %s57_s20, %s234_s21  ;;  %p240_p2 = scmp.lt.s32.totalorder %s234_s21, %s234_s21 }
   0x6   :  { %p241_p3 = por %p240_p2, %p239_p1 }
   0x8   :  { %p242_p4 = pnand %p241_p3, %p235_p0 }
   0xa   :  { %245 = shalt.err (!%p242_p4)
}
   0xb   :  { %s322_s22 = smov [#allocation9]   ;;  %s323_s23 = smov [#allocation4]  }
   0xc   :  { %59 = dma.vmem_to_smem %s57_s20, 16, %s322_s22, [#allocation10]  }
   0xd   :  { %s25_s24 = sshll.u32 %s323_s23, 4  ;;  %s46_s27 = sshll.u32 %s485_s2, 4  ;;  %s26_s24 = int_to_ptr.vmem [resolvable:$true] %s25_s24  ;;  %s47_s27 = int_to_ptr.vmem [resolvable:$true] %s46_s27 }
   0xe   :  { %s246_s29 = scalar_lea.hbm %s483_s0, 16 }
   0xf   :  { %p247_p5 = scmp.ne.s32.totalorder %s483_s0, %s246_s29  ;;  %p250_p6 = scmp.lt.u32.totalorder %s246_s29, %s483_s0 }
  0x11   :  { %p252_p7 = pnand %p250_p6, %p247_p5 }
  0x13   :  { %255 = shalt.err (!%p252_p7)
}
  0x14   :  { %s256_s9 = scalar_lea.vmem %s26_s24, 16  ;;  %s260_s10 = scalar_lea.vmem %s26_s24, 32 }
  0x15   :  { %p257_p8 = scmp.ne.s32.totalorder %s26_s24, %s256_s9  ;;  %p261_p9 = scmp.lt.s32.totalorder %s26_s24, %s26_s24 }
  0x16   :  { %p262_p10 = scmp.lt.s32.totalorder %s260_s10, %s256_s9 }
  0x18   :  { %p263_p11 = por %p262_p10, %p261_p9 }
  0x1a   :  { %p264_p12 = pnand %p263_p11, %p257_p8 }
  0x1c   :  { %267 = shalt.err (!%p264_p12)
}
  0x1d   :  { %28 = dma.hbm_to_vmem [thread:$0]  %s483_s0, 16, %s26_s24, [#allocation5]  }
  0x1e   :  { %s66_s14 = sshll.u32 %s487_s4, 4  ;;  %s268_s15 = scalar_lea.vmem %s47_s27, 16  ;;  %s67_s14 = int_to_ptr.vmem [resolvable:$true] %s66_s14 }
  0x1f   :  { %p269_p13 = scmp.ne.s32.totalorder %s47_s27, %s268_s15  ;;  %p273_p0 = scmp.lt.s32.totalorder %s47_s27, %s47_s27 }
  0x20   :  { %p274_p1 = scmp.lt.s32.totalorder %s268_s15, %s268_s15 }
  0x22   :  { %p275_p2 = por %p274_p1, %p273_p0 }
  0x24   :  { %p276_p3 = pnand %p275_p2, %p269_p13 }
  0x26   :  { %279 = shalt.err (!%p276_p3)
}
  0x27   :  { %s324_s16 = smov [#allocation8]   ;;  %s280_s17 = scalar_lea.vmem %s67_s14, 16 }
  0x28   :  { %49 = dma.vmem_to_smem %s47_s27, 16, %s324_s16, [#allocation7]  }
  0x29   :  { %p281_p4 = scmp.ne.s32.totalorder %s67_s14, %s280_s17  ;;  %p285_p5 = scmp.lt.s32.totalorder %s67_s14, %s67_s14 }
  0x2a   :  { %p286_p6 = scmp.lt.s32.totalorder %s280_s17, %s280_s17 }
  0x2c   :  { %p287_p7 = por %p286_p6, %p285_p5 }
  0x2e   :  { %p288_p8 = pnand %p287_p7, %p281_p4 }
  0x30   :  { %291 = shalt.err (!%p288_p8)
}
  0x31   :  { %s325_s0 = smov [#allocation11]  }
  0x32   :  { %69 = dma.vmem_to_smem %s67_s14, 16, %s325_s0, [#allocation10]  }
  0x33   :  { %314 = dma.done.wait [#allocation5], 16  }
  0x34   :  { %315 = vsyncadd [#allocation5], 4294967280 }
  0x35   :  { %316 = dma.done.wait [#allocation7], 16  }
  0x36   :  { %317 = vsyncadd [#allocation7], 4294967280 }
  0x37   :  { %318 = dma.done.wait [#allocation10], 32  }
  0x38   :  { %319 = vsyncadd [#allocation10], 4294967264 }
  0x39   :  { %82 = sfence }
  0x3a   :  { %v379_v0 = vld [vmem:[#allocation4] sm:$0x1]  ;;  %v108_v1 = vld [vmem:[%s484_s1] sm:$0x1]  ;;  %v326_v2 = vmov 0.0   ;;  %s116_s19 = sld [smem:[#allocation8]] }
  0x3b   :  { %105 = vst [vmem:[#allocation2] sm:$0x1] %v326_v2  ;;  %106 = vst [vmem:[#allocation3] sm:$0x1] %v326_v2  ;;  %v109_v3 = vunpack.c.0.s8 %v108_v1  ;;  %v385_v4 = vfloor.f32 %v379_v0  ;;  %s119_s20 = sld [smem:[#allocation9]]  ;;  %s387_s22 = sld [smem:[#allocation8 + $0x1]] }
  0x3c   :  { %s123_s21 = sld [smem:[#allocation11]]  ;;  %s391_s23 = sld [smem:[#allocation9 + $0x1]] }
  0x3d   :  { %v389_v5 = vcvt.s32.f32 %v109_v3  ;;  %s393_s24 = sld [smem:[#allocation11 + $0x1]]  ;;  %v113_v6 = vmul.f32 0.25, %v385_v4  ;;  %s396_s1 = sld [smem:[#allocation8 + $0x2]]  ;;  %vm114_vm0 = vcmp.eq.f32.partialorder %v385_v4, 0.0  ;;  %vm126_vm2 = vcmp.eq.f32.partialorder %v385_v4, 1.0 }
  0x3e   :  { %s398_s25 = sld [smem:[#allocation9 + $0x2]]  ;;  %vm138_vm3 = vcmp.eq.f32.partialorder %v385_v4, 2.0  ;;  %v112_v7 = vsub.f32 %v379_v0, %v385_v4  ;;  %s410_s27 = sld [smem:[#allocation8 + $0x3]]  ;;  %vm150_vm6 = vcmp.eq.f32.partialorder %v385_v4, 3.0  ;;  %vm162_vm8 = vcmp.eq.f32.partialorder %v385_v4, 4.0 }
  0x3f   :  { %vm115_vm1 = vcmp.eq.f32.partialorder %v389_v5, 0.0  ;;  %s404_s26 = sld [smem:[#allocation11 + $0x2]]  ;;  %vm127_vm4 = vcmp.eq.f32.partialorder %v389_v5, 1.0  ;;  %vm139_vm5 = vcmp.eq.f32.partialorder %v389_v5, 2.0  ;;  %s412_s3 = sld [smem:[#allocation9 + $0x3]]  ;;  %vm151_vm7 = vcmp.eq.f32.partialorder %v389_v5, 3.0 }
  0x40   :  { %v117_v8 = vstv %s116_s19  ;;  %s224_s28 = sld [smem:[#allocation11 + $0x3]]  ;;  %s416_s29 = sld [smem:[#allocation8 + $0x4]]  ;;  %vm163_vm9 = vcmp.eq.f32.partialorder %v389_v5, 4.0 }
  0x41   :  { %v120_v9 = vstv %s119_s20  ;;  %v118_v10 = vsel %vm114_vm0, %v117_v8, %v113_v6  ;;  %v122_v12 = vsel %vm115_vm1, %v117_v8, 0.0  ;;  %s424_s30 = sld [smem:[#allocation9 + $0x4]]  ;;  %v129_v15 = vstv %s387_s22  ;;  %s327_s7 = smov [#allocation12]  }
  0x42   :  { %v121_v11 = vsel %vm114_vm0, %v120_v9, 0.25  ;;  %v124_v13 = vstv %s123_s21  ;;  %s426_s6 = sld [smem:[#allocation11 + $0x4]]  ;;  %v132_v16 = vstv %s391_s23  ;;  %v130_v18 = vsel %vm126_vm2, %v129_v15, %v118_v10  ;;  %v182_v36 = vld [vmem:[#allocation3] sm:$0x1]  ;;  %v177_v49 = vld [vmem:[#allocation2] sm:$0x1] }
  0x43   :  { %v125_v14 = vsel %vm115_vm1, %v124_v13, 0.0  ;;  %v136_v17 = vstv %s393_s24  ;;  %v133_v19 = vsel %vm126_vm2, %v132_v16, %v121_v11  ;;  %v134_v20 = vsel %vm127_vm4, %v129_v15, %v122_v12  ;;  %s200_s8 = sshll.u32 %s327_s7, 4  ;;  %s201_s8 = int_to_ptr.vmem [resolvable:$true] %s200_s8 }
  0x44   :  { %v137_v21 = vsel %vm127_vm4, %v136_v17, %v125_v14  ;;  %v141_v22 = vstv %s396_s1  ;;  %v144_v23 = vstv %s398_s25  ;;  %v153_v29 = vstv %s410_s27  ;;  %s292_s9 = scalar_lea.vmem %s201_s8, 32  ;;  %p297_p10 = scmp.lt.s32.totalorder %s201_s8, %s201_s8 }
  0x45   :  { %v148_v24 = vstv %s404_s26  ;;  %v142_v25 = vsel %vm138_vm3, %v141_v22, %v130_v18  ;;  %v145_v26 = vsel %vm138_vm3, %v144_v23, %v133_v19  ;;  %v146_v27 = vsel %vm139_vm5, %v141_v22, %v134_v20  ;;  %p293_p9 = scmp.ne.s32.totalorder %s201_s8, %s292_s9  ;;  %p298_p11 = scmp.lt.s32.totalorder %s292_s9, %s292_s9 }
  0x46   :  { %v149_v28 = vsel %vm139_vm5, %v148_v24, %v137_v21  ;;  %v156_v30 = vstv %s412_s3  ;;  %v160_v31 = vstv %s224_s28  ;;  %v165_v32 = vstv %s416_s29 }
  0x47   :  { %v154_v33 = vsel %vm150_vm6, %v153_v29, %v142_v25  ;;  %v157_v34 = vsel %vm150_vm6, %v156_v30, %v145_v26  ;;  %v161_v35 = vsel %vm151_vm7, %v160_v31, %v149_v28  ;;  %v158_v37 = vsel %vm151_vm7, %v153_v29, %v146_v27  ;;  %p299_p12 = por %p298_p11, %p297_p10 }
  0x48   :  { %v168_v38 = vstv %s424_s30  ;;  %v172_v39 = vstv %s426_s6  ;;  %v166_v40 = vsel %vm162_vm8, %v165_v32, %v154_v33  ;;  %v170_v45 = vsel %vm163_vm9, %v165_v32, %v158_v37 }
  0x49   :  { %v169_v41 = vsel %vm162_vm8, %v168_v38, %v157_v34  ;;  %v173_v42 = vsel %vm163_vm9, %v172_v39, %v161_v35  ;;  %p300_p13 = pnand %p299_p12, %p293_p9 }
  0x4a   :  { %v174_v43 = vmul.f32 %v169_v41, %v112_v7  ;;  %v183_v44 = vadd.f32 %v182_v36, %v173_v42 }
  0x4c   :  { %v175_v46 = vadd.f32 %v174_v43, %v166_v40  ;;  %184 = vst [vmem:[#allocation3] sm:$0x1] %v183_v44 }
  0x4e   :  { %v176_v47 = vsub.f32 %v175_v46, %v170_v45 }
  0x50   :  { %v178_v48 = vmul.f32 %v176_v47, %v176_v47 }
  0x52   :  { %v179_v50 = vmul.f32 %v178_v48, %v173_v42 }
  0x53   :  { %v191_v51 = vld [vmem:[#allocation3] sm:$0x1] }
  0x54   :  { %v180_v52 = vadd.f32 %v179_v50, %v177_v49  ;;  %193 = vst [vmem:[#allocation12 + $0x1] sm:$0x1] %v191_v51 }
  0x56   :  { %181 = vst [vmem:[#allocation2] sm:$0x1] %v180_v52 }
  0x5d   :  { %v188_v53 = vld [vmem:[#allocation2] sm:$0x1] }
  0x5e   :  { %190 = vst [vmem:[#allocation12] sm:$0x1] %v188_v53 }
  0x5f   :  { %303 = shalt.err (!%p300_p13)
}
  0x60   :  { %s304_s11 = scalar_lea.hbm %s488_s5, 32 }
  0x61   :  { %p305_p0 = scmp.ne.s32.totalorder %s488_s5, %s304_s11  ;;  %p308_p1 = scmp.lt.u32.totalorder %s304_s11, %s488_s5 }
  0x63   :  { %p310_p2 = pnand %p308_p1, %p305_p0 }
  0x65   :  { %313 = shalt.err (!%p310_p2)
}
  0x66   :  { %203 = dma.vmem_to_hbm [thread:$0]  %s201_s8, 32, %s488_s5, [#allocation6]  }
  0x67   :  { %320 = dma.done.wait [#allocation6], 32  }
  0x68   :  { %321 = vsyncadd [#allocation6], 4294967264 }
  0x69   :  { %207 = vsyncpa [#allocation5], 1 }
  0x6a   :  { %208 = vsyncpa [#allocation6], 1 }
  0x6b   :  { %209 = vsyncpa [#allocation7], 1 }
  0x6c   :  { %210 = vsyncpa [#allocation10], 1 }

</bundles_post_ra>
